<compile_context>
chip_gen: v5e
topology: v5e:2x2
jax: 0.10.0
libtpu: 0.0.40
codegen_flags: <defaults>
</compile_context>

<pallas_src>
import math
import functools

import jax
import jax.numpy as jnp
from jax.experimental import pallas as pl
from jax.experimental.pallas import tpu as pltpu


# --------------------------------- kernels --------------------------------- #

def _pe_add_kernel(x_ref, pe_ref, o_ref, *, seq_axis):
    """out = x + pe, accumulated in f32 (torch keeps `pe` in f32)."""
    x = x_ref[...].astype(jnp.float32)
    pe = pe_ref[...]                            # (TILE_S, 1, D), f32
    if seq_axis == 1:                           # batch_first: x block is (TB, TS, D)
        pe = pe[:, 0, :][None, :, :]            # -> (1, TS, D)
    o_ref[...] = (x + pe).astype(o_ref.dtype)


def _hash_u32(h):
    """splitmix32-style finalizer; plain VPU integer ops (no pltpu PRNG)."""
    h = (h ^ (h >> jnp.uint32(16))) * jnp.uint32(0x7FEB352D)
    h = (h ^ (h >> jnp.uint32(15))) * jnp.uint32(0x846CA68B)
    h = h ^ (h >> jnp.uint32(16))
    return h


def _pe_add_dropout_kernel(seed_ref, x_ref, pe_ref, o_ref, *,
                           seq_axis, n_batch, d_model, threshold31, scale):
    """Training path: inverted dropout with a counter-based hash PRNG."""
    si = pl.program_id(0)
    bi = pl.program_id(1)
    shape = x_ref.shape                          # static (t0, t1, D)

    x = x_ref[...].astype(jnp.float32)
    pe = pe_ref[...]
    if seq_axis == 1:
        pe = pe[:, 0, :][None, :, :]
    y = x + pe

    # Dropout mask keyed on the global logical (s, b, d) coordinate, so it does
    # not depend on tile sizes or grid shape.
    i0 = jax.lax.broadcasted_iota(jnp.int32, shape, 0)
    i1 = jax.lax.broadcasted_iota(jnp.int32, shape, 1)
    i2 = jax.lax.broadcasted_iota(jnp.int32, shape, 2)
    if seq_axis == 0:                            # x block (TS, TB, D)
        s = si * shape[0] + i0
        b = bi * shape[1] + i1
    else:                                        # x block (TB, TS, D)
        b = bi * shape[0] + i0
        s = si * shape[1] + i1
    flat = ((s * n_batch + b) * d_model + i2).astype(jnp.uint32)

    seed = seed_ref[0].astype(jnp.uint32)
    h = _hash_u32(flat ^ (seed * jnp.uint32(0x9E3779B9)))
    r = (h >> jnp.uint32(1)).astype(jnp.int32)   # uniform in [0, 2^31)
    keep = r >= jnp.int32(threshold31)           # P(drop) == dropout_p

    o_ref[...] = jnp.where(keep, y * jnp.float32(scale),
                           jnp.float32(0.0)).astype(o_ref.dtype)


# ------------------------------ host-side glue ------------------------------ #

def make_positional_encoding_table(max_seq_len: int, d_model: int):
    """Mirrors the module __init__: pe buffer of shape (L, 1, D), f32."""
    position = jnp.arange(max_seq_len, dtype=jnp.float32)[:, None]             # (L, 1)
    div_term = jnp.exp(
        jnp.arange(0, d_model, 2, dtype=jnp.float32) * (-math.log(10000.0) / d_model))
    pe = jnp.zeros((max_seq_len, 1, d_model), jnp.float32)
    pe = pe.at[:, 0, 0::2].set(jnp.sin(position * div_term))
    pe = pe.at[:, 0, 1::2].set(jnp.cos(position * div_term))
    return pe                                                                    # (L, 1, D)


def _choose_tiles(n_lead, n_sub, d_model, in_itemsize, out_itemsize,
                  target_bytes=4 * 1024 * 1024):
    """Block = (tile_lead, tile_sub, d_model); d_model stays full (lanes).

    tile_sub is the sublane dim: keep it full unless d_model % 128 == 0 and the
    batch/seq rows are sublane-aligned, in which case split in multiples of 8.
    tile_lead is the unconstrained outer dim, sized from target_bytes."""
    bytes_per = max(in_itemsize, out_itemsize)
    row_bytes = d_model * bytes_per
    if d_model % 128 == 0 and n_sub % 8 == 0 and n_sub * row_bytes > target_bytes:
        tile_sub = max(8, min(n_sub, (target_bytes // row_bytes) // 8 * 8))
    else:
        tile_sub = n_sub
    slab = max(tile_sub * row_bytes, 1)
    tile_lead = max(1, min(n_lead, target_bytes // slab))
    # v7x megacore: make sure the parallel grid has >= 2 steps when possible.
    if pl.cdiv(n_lead, tile_lead) * pl.cdiv(n_sub, tile_sub) < 2 and n_lead > 1:
        tile_lead = (n_lead + 1) // 2
    return int(tile_lead), int(tile_sub)


def positional_encoding(x, pe_table, *, dropout_p=0.1, training=False, seed=0,
                        batch_first=False):
    """Forward of PostionalEncoding.

    x: (S, B, D) if batch_first=False (module default), else (B, S, D).
    Returns x + pe[:S] (with inverted dropout if training), in f32.
    No host-side transposes: both layouts are handled natively by BlockSpecs."""
    assert x.ndim == 3
    seq_axis = 1 if batch_first else 0
    d0, d1, D = x.shape
    S = x.shape[seq_axis]
    B = x.shape[1 - seq_axis]
    assert pe_table.shape[0] >= S and pe_table.shape[2] == D
    pe = pe_table[:S]                            # (S, 1, D), like self.pe[:x.size(x_dim)]

    out_dtype = jnp.promote_types(x.dtype, pe.dtype)   # torch promotes to f32
    t0, t1 = _choose_tiles(d0, d1, D, x.dtype.itemsize,
                           jnp.dtype(out_dtype).itemsize)

    if seq_axis == 0:    # x is (S, B, D): seq tiles outer, batch tiles inner
        tile_s = t0
        grid = (pl.cdiv(S, t0), pl.cdiv(B, t1))
        x_map = lambda si, bi, *_: (si, bi, 0)
    else:                # x is (B, S, D)
        tile_s = t1
        grid = (pl.cdiv(S, t1), pl.cdiv(B, t0))
        x_map = lambda si, bi, *_: (bi, si, 0)

    x_spec = pl.BlockSpec((t0, t1, D), x_map)
    pe_spec = pl.BlockSpec((tile_s, 1, D), lambda si, bi, *_: (si, 0, 0))
    out_spec = pl.BlockSpec((t0, t1, D), x_map)
    out_shape = jax.ShapeDtypeStruct(x.shape, out_dtype)

    compiler_params = pltpu.CompilerParams(
        dimension_semantics=("parallel", "parallel"),   # megacore sharding on v7x
        vmem_limit_bytes=48 * 1024 * 1024,              # fits v7x's 64 MiB/TC VMEM
    )

    if (not training) or dropout_p == 0.0:
        kernel = functools.partial(_pe_add_kernel, seq_axis=seq_axis)
        gs = pltpu.PrefetchScalarGridSpec(
            num_scalar_prefetch=0, grid=grid,
            in_specs=[x_spec, pe_spec], out_specs=out_spec)
        return pl.pallas_call(kernel, out_shape=out_shape, grid_spec=gs,
                              compiler_params=compiler_params)(x, pe)

    threshold31 = min(int(dropout_p * (1 << 31)), (1 << 31) - 1)
    scale = 1.0 / (1.0 - dropout_p)
    kernel = functools.partial(
        _pe_add_dropout_kernel, seq_axis=seq_axis, n_batch=B, d_model=D,
        threshold31=threshold31, scale=scale)
    gs = pltpu.PrefetchScalarGridSpec(
        num_scalar_prefetch=1, grid=grid,
        in_specs=[x_spec, pe_spec], out_specs=out_spec)
    seed_arr = jnp.asarray([seed], dtype=jnp.int32)
    return pl.pallas_call(kernel, out_shape=out_shape, grid_spec=gs,
                          compiler_params=compiler_params)(seed_arr, x, pe)


# ----------------------------------- demo ----------------------------------- #

if __name__ == "__main__":
    # Small shapes consistent with the module: seq=8, batch=2, d_model=32.
    S, B, D = 8, 2, 32
    MAX_SEQ_LEN = 64

    key = jax.random.PRNGKey(0)
    x = jax.random.normal(key, (S, B, D), dtype=jnp.float32)

    pe_table = make_positional_encoding_table(MAX_SEQ_LEN, D)
    ref = x + pe_table[:S]                      # (S,1,D) broadcasts over batch

    # Eval-mode forward (dropout is identity), matching module.eval().
    out = positional_encoding(x, pe_table, dropout_p=0.1, training=False)
    out = jax.block_until_ready(out)
    assert out.shape == (S, B, D) and out.dtype == jnp.float32
    assert jnp.allclose(out, ref, atol=1e-6), "eval-mode mismatch vs reference"

    # Training-mode smoke test: every element is 0 or (x+pe)/(1-p), mask non-degenerate.
    p = 0.25
    out_tr = positional_encoding(x, pe_table, dropout_p=p, training=True, seed=123)
    out_tr = jax.block_until_ready(out_tr)
    scaled = ref / (1.0 - p)
    ok = jnp.isclose(out_tr, 0.0, atol=1e-6) | jnp.isclose(
        out_tr, scaled, rtol=1e-5, atol=1e-6)
    assert bool(jnp.all(ok)), "training-mode dropout values inconsistent"
    n_dropped = int(jnp.sum(out_tr == 0.0))
    assert 0 < n_dropped < out_tr.size, "dropout mask degenerate"

    print("KERNEL_OK")
</pallas_src>

<mosaic_0001>
module attributes {stable_mosaic.version = 11 : i64} {
  func.func @_pe_add_kernel(%arg0: i32, %arg1: i32, %arg2: memref<4x2x32xf32, #tpu.memory_space<vmem>>, %arg3: memref<4x1x32xf32, #tpu.memory_space<vmem>>, %arg4: memref<4x2x32xf32, #tpu.memory_space<vmem>>) attributes {dimension_semantics = [#tpu.dimension_semantics<parallel>, #tpu.dimension_semantics<parallel>], iteration_bounds = array<i64: 2, 1>, scalar_prefetch = 0 : i64, scratch_operands = 0 : i64, tpu.core_type = #tpu.core_type<tc>, window_params = [{transform_indices = @transform_0, window_bounds = array<i64: 4, 2, 32>}, {transform_indices = @transform_1, window_bounds = array<i64: 4, 1, 32>}, {transform_indices = @transform_2, window_bounds = array<i64: 4, 2, 32>}]} {
    %c0 = arith.constant 0 : index
    %c0_0 = arith.constant 0 : index
    %c0_1 = arith.constant 0 : index
    %0 = vector.load %arg2[%c0, %c0_0, %c0_1] : memref<4x2x32xf32, #tpu.memory_space<vmem>>, vector<4x2x32xf32>
    %c0_2 = arith.constant 0 : index
    %c0_3 = arith.constant 0 : index
    %c0_4 = arith.constant 0 : index
    %1 = vector.load %arg3[%c0_2, %c0_3, %c0_4] : memref<4x1x32xf32, #tpu.memory_space<vmem>>, vector<4x1x32xf32>
    %2 = vector.broadcast %1 : vector<4x1x32xf32> to vector<4x2x32xf32>
    %3 = arith.addf %0, %2 : vector<4x2x32xf32>
    %c0_5 = arith.constant 0 : index
    %c0_6 = arith.constant 0 : index
    %c0_7 = arith.constant 0 : index
    %4 = vector.load %arg4[%c0_5, %c0_6, %c0_7] : memref<4x2x32xf32, #tpu.memory_space<vmem>>, vector<4x2x32xf32>
    tpu.vector_store %arg4[%c0_5, %c0_6, %c0_7], %3 {strides = array<i32>} : memref<4x2x32xf32, #tpu.memory_space<vmem>>, vector<4x2x32xf32>,
    return
  }
  func.func @transform_0(%arg0: i32, %arg1: i32) -> (i32, i32, i32) {
    %c0_i32 = arith.constant 0 : i32
    %c0_i32_0 = arith.constant 0 : i32
    return %arg0, %arg1, %c0_i32 : i32, i32, i32
  }
  func.func @transform_1(%arg0: i32, %arg1: i32) -> (i32, i32, i32) {
    %c0_i32 = arith.constant 0 : i32
    %c0_i32_0 = arith.constant 0 : i32
    %c0_i32_1 = arith.constant 0 : i32
    return %arg0, %c0_i32, %c0_i32_0 : i32, i32, i32
  }
  func.func @transform_2(%arg0: i32, %arg1: i32) -> (i32, i32, i32) {
    %c0_i32 = arith.constant 0 : i32
    %c0_i32_0 = arith.constant 0 : i32
    return %arg0, %arg1, %c0_i32 : i32, i32, i32
  }
}

</mosaic_0001>

<bundles_post_ra>
// kernel: tpu_custom_call.1
= control target key start
LH: loop header
LB: loop body
LE: loop exit
PB: predicated region body
PF: predicated region fallthrough
CT: control target
= control target key end

     0   :  { %s793_s0 = inlined_call_operand.hbm [shape: f32[8,2,32], index: 0, kind: input, shape index: {}]   ;;  %s794_s1 = inlined_call_operand.hbm [shape: f32[8,1,32], index: 1, kind: input, shape index: {}]   ;;  %s795_s2 = inlined_call_operand.hbm [shape: f32[8,2,32], index: 2, kind: output, shape index: {}]  }
   0x1   :  { %796 = sst [smem:[#allocation11_spill]] %s793_s0 }
   0x2   :  { %7 = vsyncpa [#allocation3], 0 }
   0x3   :  { %9 = vsyncpa [#allocation3 + $0x1], 0 }
   0x4   :  { %10 = vsyncpa [#allocation6], 0 }
   0x5   :  { %12 = vsyncpa [#allocation6 + $0x1], 0 }
   0x6   :  { %13 = vsyncpa [#allocation4], 0 }
   0x7   :  { %15 = vsyncpa [#allocation4 + $0x1], 0  ;;  %s645_s9 = smov 0   ;;  %s647_s10 = smov 0  }
   0x8   :  { %s649_s11 = smov 0   ;;  %s651_s12 = smov 0  }
   0x9   :  { %s653_s13 = smov 0   ;;  %s655_s14 = smov 0  }
   0xa LB: > { %s379_s15 = sadd.s32 4294967295, %s622_s14   ;;  %s380_s16 = sadd.s32 4294967294, %s622_s14   ;;  %s622_s14 = sphi %s655_s14, %s21_s14   ;;  %s618_s13 = sphi %s653_s13, %s807_s13   ;;  %s614_s12 = sphi %s651_s12, %s806_s12   ;;  %s610_s11 = sphi %s649_s11, %s805_s11   ;;  %s606_s10 = sphi %s647_s10, %s804_s10   ;;  %s602_s9 = sphi %s645_s9, %s803_s9  }
   0xb   : > { %s33_s17 = sadd.s32 1, %s618_s13  ;;  %s42_s18 = sadd.s32 1, %s610_s11 }
   0xc   : > { %p35_p0 = scmp.ge.s32.totalorder %s33_s17, 2  ;;  %p49_p1 = scmp.ne.s32.totalorder %s610_s11, %s606_s10 }
   0xd   : > { %p50_p2 = scmp.eq.s32.totalorder %s622_s14, 0  ;;  %p55_p3 = scmp.ne.s32.totalorder %s606_s10, %s602_s9 }
   0xe   : > { %s809_s17 = smov (%p35_p0, %s33_s17), 0  ;;  %p56_p5 = scmp.eq.s32.totalorder %s379_s15, 0 }
   0xf   : > { %p686_p4 = por %p50_p2, %p49_p1  ;;  %s37_s20 = ssub.s32 %s618_s13, %s809_s17 }
  0x10   : > { %p107_p6 = scmp.eq.s32.totalorder %s379_s15, 1  ;;  %p40_p7 = scmp.eq.s32.totalorder %s37_s20, 0 }
  0x11   : > { %p692_p8 = por %p56_p5, %p55_p3  ;;  %p113_p10 = scmp.eq.s32.totalorder %s380_s16, 1 }
  0x12   : > { %p696_p9 = por %p107_p6, %p49_p1  ;;  %p382_p12 = scmp.ge.s32.totalorder %s622_s14, 2 }
  0x13   : > { %s701_s23 = scalar_select %p40_p7, %s610_s11, %s42_s18  }
  0x14   : > { %p703_p11 = por %p113_p10, %p55_p3  ;;  %p416_p13 = scmp.lt.s32.totalorder %s622_s14, 2 }
  0x15   : > { %s710_s25 = sand.u32 1, %s610_s11   ;;  %s397_s27 = sshll.u32 %s618_s13, 3 }
  0x16   : > { %s383_s26 = sshll.u32 %s710_s25, 3  ;;  %s801_s0 = sld [smem:[#allocation11_spill]] }
  0x17   : > { %s137_s3 = scalar_lea.vmem [#allocation2], %s383_s26  ;;  %p719_p0 = pnand %p416_p13, %p686_p4 }
  0x18   : > { %s146_s4 = sshll.u32 %s137_s3, 4  ;;  %p388_p1 = scmp.ge.s32.totalorder %s622_s14, 1  ;;  %s147_s4 = int_to_ptr.vmem [resolvable:$true] %s146_s4 }
  0x19   : > { %s134_s7 = scalar_lea.sflag [#allocation3], %s710_s25  ;;  %s624_s8 = smov 32  }
  0x1a   : > { %s625_s15 = smov 2   ;;  %p175_p2 = scmp.lt.s32.totalorder %s622_s14, 3 }
  0x1b   : > { %s386_s16 = sshll.u32 %s710_s25, 2  ;;  %s387_s18 = sshll.u32 %s618_s13, 2 }
  0x1c   : > { %s143_s30 = scalar_lea.hbm %s801_s0, %s397_s27  ;;  %p176_p3 = pnand %p388_p1, %p175_p2 }
  0x1d   : > { %s144_s5 = sshll.u32 %s143_s30, 4  ;;  %s164_s19 = scalar_lea.hbm %s794_s1, %s387_s18  ;;  %s145_s5 = int_to_ptr.hbm [resolvable:$true] %s144_s5 }
  0x1e   : > { %408 = dma.hbm_to_vmem [thread:$0]  (!%p719_p0), %s145_s5, 128, %s147_s4, %s134_s7, %s624_s8, %s624_s8, %s625_s15  }
  0x1f   : > { %s160_s27 = scalar_lea.vmem [#allocation5], %s386_s16  ;;  %s165_s29 = sshll.u32 %s164_s19, 4  ;;  %s166_s29 = int_to_ptr.hbm [resolvable:$true] %s165_s29 }
  0x20   : > { %s167_s28 = sshll.u32 %s160_s27, 4  ;;  %s157_s30 = scalar_lea.sflag [#allocation6], %s710_s25  ;;  %s168_s28 = int_to_ptr.vmem [resolvable:$true] %s167_s28 }
  0x21   : > { %s626_s3 = smov 16   ;;  %s627_s0 = smov 1  }
  0x22   : > { %411 = dma.hbm_to_vmem [thread:$0]  (!%p719_p0), %s166_s29, 64, %s168_s28, %s157_s30, %s626_s3, %s626_s3, %s627_s0  }
  0x23   : > { %179 = sbr.rel (%p176_p3) target bundleno = 61 (0x3d), region = 28  ;;  %s737_s4 = sand.u32 (!%p176_p3), 1, %s606_s10  }
  0x24   : > { %s389_s5 = sshll.u32 (!%p176_p3), %s737_s4, 3  ;;  %s182_s7 = scalar_lea.sflag (!%p176_p3), [#allocation3], %s737_s4 }
  0x25   : > { %s185_s8 = scalar_lea.vmem (!%p176_p3), [#allocation2], %s389_s5 }
  0x28   : > { %589 = dma.done.wait (%p692_p8), %s182_s7, 128  }
  0x29   : > { %591 = vsyncadd (%p692_p8), %s182_s7, 4294967168  ;;  %s390_s25 = sshll.u32 %s737_s4, 2  ;;  %s192_s0 = scalar_lea.sflag [#allocation6], %s737_s4 }
  0x2a   : > { %s195_s6 = scalar_lea.vmem [#allocation5], %s390_s25 }
  0x2b   : > { %593 = dma.done.wait (%p692_p8), %s192_s0, 64  }
  0x2c   : > { %595 = vsyncadd (%p692_p8), %s192_s0, 4294967232  ;;  %s398_s15 = sshll.u32 %s614_s12, 3  ;;  %vm249_vm0 = vcmask 254976   ;;  %s221_s26 = scalar_lea.vmem [#allocation7], %s389_s5  ;;  %v225_v0 = vld [vmem:[%s185_s8] sm:$0x3] }
  0x2d   : > { %s267_s20 = scalar_lea.hbm %s795_s2, %s398_s15  ;;  %s268_s19 = sshll.u32 %s221_s26, 4  ;;  %v472_v1 = vld [vmem:[%s195_s6] ss:$0 sm:$0xff]  ;;  %v226_v2 = vld [vmem:[%s185_s8 + $0x2] sm:$0x3]  ;;  %s269_s19 = int_to_ptr.vmem [resolvable:$true] %s268_s19 }
  0x2e   : > { %s270_s27 = sshll.u32 %s267_s20, 4  ;;  %v473_v3 = vld [vmem:[%s195_s6 + $0x1] ss:$0 sm:$0xff]  ;;  %v245_v4 = vadd.f32 %v472_v1, %v225_v0  ;;  %v227_v5 = vld [vmem:[%s185_s8 + $0x4] sm:$0x3]  ;;  %s255_s12 = scalar_lea.sflag [#allocation4], %s737_s4  ;;  %s271_s27 = int_to_ptr.hbm [resolvable:$true] %s270_s27 }
  0x2f   : > { %v474_v6 = vld [vmem:[%s195_s6 + $0x2] ss:$0 sm:$0xff]  ;;  %v246_v7 = vadd.f32 %v473_v3, %v226_v2  ;;  %v228_v8 = vld [vmem:[%s185_s8 + $0x6] sm:$0x3]  ;;  %v475_v9 = vld [vmem:[%s195_s6 + $0x3] ss:$0 sm:$0xff] }
  0x30   : > { %250 = vst.msk [vmem:[%s221_s26] sm:$0x3] %vm249_vm0, %v245_v4  ;;  %v247_v10 = vadd.f32 %v474_v6, %v227_v5  ;;  %v248_v11 = vadd.f32 %v475_v9, %v228_v8  ;;  %s550_s21 = sshra.s32 %s271_s27, 4  ;;  %s556_s3 = scalar_lea.hbm %s795_s2, 16  ;;  %s551_s21 = int_to_ptr.hbm [resolvable:$true] %s550_s21 }
  0x31   : > { %251 = vst.msk [vmem:[%s221_s26 + $0x2] sm:$0x3] %vm249_vm0, %v246_v7  ;;  %s552_s28 = scalar_lea.hbm %s551_s21, 8  ;;  %p557_p7 = scmp.lt.s32.totalorder %s551_s21, %s795_s2 }
  0x32   : > { %252 = vst.msk [vmem:[%s221_s26 + $0x4] sm:$0x3] %vm249_vm0, %v247_v10  ;;  %p553_p4 = scmp.ne.s32.totalorder %s551_s21, %s552_s28  ;;  %p558_p8 = scmp.lt.s32.totalorder %s556_s3, %s552_s28 }
  0x33   : > { %253 = vst.msk [vmem:[%s221_s26 + $0x6] sm:$0x3] %vm249_vm0, %v248_v11 }
  0x34   : > { %p554_p5 = pnand %p553_p4, %p696_p9  ;;  %p559_p10 = por %p558_p8, %p557_p7 }
  0x36   : > { %p555_p6 = pneg %p554_p5 }
  0x38   : > { %p560_p13 = pnand %p559_p10, %p555_p6 }
  0x3a   : > { %563 = shalt.err (!%p560_p13)
}
  0x3b   : > { %s628_s4 = smov 32   ;;  %s629_s8 = smov 2  }
  0x3c   : > { %403 = dma.vmem_to_hbm [thread:$0]  (%p696_p9), %s269_s19, 128, %s271_s27, %s255_s12, %s628_s4, %s628_s4, %s629_s8  }
  0x3d PF: > { %s285_s25 = sand.u32 1, %s602_s9   ;;  %p413_p0 = pnand %p382_p12, %p703_p11 }
  0x3e   : > { %s286_s0 = scalar_lea.sflag [#allocation4], %s285_s25 }
  0x3f   : > { %p414_p1 = pneg %p413_p0 }
  0x41   : > { %597 = dma.done.wait (%p414_p1), %s286_s0, 128  }
  0x42   : > { %599 = vsyncadd (%p414_p1), %s286_s0, 4294967168  ;;  %s21_s14 = sadd.s32 1, %s622_s14   ;;  %s803_s9 = smov %s606_s10 }
  0x43   : > { %p18_p2 = scmp.ge.s32.totalorder %s21_s14, 4   ;;  %s804_s10 = smov %s610_s11 }
  0x44   : > { %s805_s11 = smov %s701_s23  ;;  %s806_s12 = smov %s618_s13 }
  0x45   : > { %s807_s13 = smov %s809_s17  ;;  %20 = sbr.rel (!%p18_p2) target bundleno = 10 (0xa), region = 86 }
  0x4a   :  { %292 = vsyncpa [#allocation3], 1 }
  0x4b   :  { %294 = vsyncpa [#allocation3 + $0x1], 1 }
  0x4c   :  { %295 = vsyncpa [#allocation6], 1 }
  0x4d   :  { %297 = vsyncpa [#allocation6 + $0x1], 1 }
  0x4e   :  { %298 = vsyncpa [#allocation4], 1 }
  0x4f   :  { %300 = vsyncpa [#allocation4 + $0x1], 1 }

</bundles_post_ra>
